<compile_context>
chip_gen: v7x
topology: tpu7x:2x2x1
jax: 0.10.0
libtpu: 0.0.40
codegen_flags: <defaults>
</compile_context>

<pallas_src>
import jax
import jax.numpy as jnp
from jax.experimental import pallas as pl
from jax.experimental.pallas import tpu as pltpu

CHAR_EMB_DIM = 30          # self._char_emb_dim
CV_DIM = 50                # self._cv_dim
NGRAM_FILTER_SIZES = (3,)  # default ngram_filter_sizes
NUM_FILTERS = CV_DIM // len(NGRAM_FILTER_SIZES)   # 50
CHAR_VOCAB = 40            # stands in for len(indexer._char2idx)

LANE = 128
SUBLANE = 8


def _round_up(x, m):
    return (x + m - 1) // m * m


def _dual_tensorcore():
    """True on chips with 2 TensorCores (v7x); used only to bias grid-step count."""
    try:
        kind = jax.devices()[0].device_kind.lower()
    except Exception:  # pragma: no cover - conservative fallback
        return False
    return "v7" in kind or "7x" in kind


def _make_char_cnn_kernel(K, Vp, L, chunk, F):
    """Fused embedding-gather + Conv1d(k=K, no bias) + ReLU + max kernel.

    Kernel refs:
      ids_ref:   (TN, L)      int32 -- char ids for TN tokens (TN % chunk == 0)
      table_ref: (K*Vp, Fp)   bf16/f32 -- stacked fused (emb @ conv) table
      out_ref:   (TN, F)      f32  -- pooled filter activations
    """
    lout = L - K + 1

    def kernel(ids_ref, table_ref, out_ref):
        tn = ids_ref.shape[0]
        Fp = table_ref.shape[1]
        n_chunks = tn // chunk

        # Resident weights + iota hoisted out of the chunk loop (no CSE of
        # broadcasts inside loops).
        table = table_ref[...]                                   # (K*Vp, Fp)
        v_iota = jax.lax.broadcasted_iota(jnp.int32, (1, Vp), 1)

        def body(c, carry):
            base = pl.multiple_of(c * chunk, chunk)
            ids = ids_ref[pl.ds(base, chunk), :]                 # (chunk, L) int32

            # One (chunk, Vp) one-hot per character position; built directly in
            # the table dtype from the compare (no f32 select pass).  Each of
            # the K*lout window slots below reuses one of these L blocks.
            oh = [(ids[:, p:p + 1] == v_iota).astype(table.dtype)
                  for p in range(L)]

            # Windowed LHS, rows ordered l-major so the position-max later is a
            # pure VPU max of lout slabs:
            #   w[l*chunk + n, k*Vp + v] = (ids[n, l + k] == v)
            # Lane concat is at 128-aligned offsets and row concat is in whole
            # chunk (multiple-of-8) groups -> no relayout of the big tensors.
            w = jnp.concatenate(
                [jnp.concatenate([oh[l + k] for k in range(K)], axis=1)
                 for l in range(lout)],
                axis=0)                                          # (lout*chunk, K*Vp)

            # Conv over all K offsets in ONE 384-deep MXU contraction.
            conv = jnp.dot(w, table,
                           preferred_element_type=jnp.float32)   # (lout*chunk, Fp)
            conv = conv.reshape(lout, chunk, Fp)                 # leading split: free

            # ReLU and max commute (ReLU monotone) -> max first (8x less work).
            pooled = jnp.maximum(jnp.max(conv, axis=0), 0.0)     # (chunk, Fp)
            out_ref[pl.ds(base, chunk), :] = pooled[:, :F].astype(out_ref.dtype)
            return carry

        jax.lax.fori_loop(0, n_chunks, body, 0, unroll=True)

    return kernel


def build_fused_table(emb_table, conv_w, *, table_dtype=jnp.bfloat16):
    """fused[k, v, f] = emb_table[v, :] @ conv_w[f, :, k], padded, returns (K, Vp, Fp).

    emb_table: (V, D) f32 (row 0 forced to zero -> padding_idx=0)
    conv_w:    (F, D, K) f32 (torch Conv1d weight layout)

    Fp is padded to 64 (not 128): F=50 <= 64, and the zero half of a 128-wide
    output dominates on-chip traffic; only the small HBM store becomes masked.
    Pass table_dtype=jnp.float32 for bit-close-to-torch results (the table is
    ~100-200 KB either way and stays VMEM-resident).
    """
    V, D = emb_table.shape
    F, _, K = conv_w.shape
    emb = emb_table.astype(jnp.float32).at[0].set(0.0)          # padding_idx=0
    fused = jnp.einsum('vd,fdk->kvf', emb, conv_w.astype(jnp.float32),
                       precision=jax.lax.Precision.HIGHEST)     # (K, V, F)
    v_pad = _round_up(V, LANE)   # each k-block occupies whole 128-lane groups
    f_pad = _round_up(F, 64)
    fused = jnp.pad(fused, ((0, 0), (0, v_pad - V), (0, f_pad - F)))
    return fused.astype(table_dtype)


def char_cnn_pallas(ids, fused_table, n_filters, *, tile_n=512, chunk=32):
    """ids: (N, L) int32; fused_table: (K, Vp, Fp) -> (N, n_filters) f32."""
    N, L = ids.shape
    K, Vp, Fp = fused_table.shape
    F = n_filters
    assert L >= K, f"char_length={L} must be >= ngram size {K}"
    assert F <= Fp

    chunk = max(SUBLANE, _round_up(chunk, SUBLANE))
    # Big grid tiles amortize the ~0.35us/grid-step overhead; the in-kernel
    # chunk loop keeps the live working set small regardless of tile_n.
    tile_n = _round_up(max(chunk, min(tile_n, N)), chunk)
    if _dual_tensorcore() and N > tile_n:
        # v7x only: prefer an even grid-step count so both TensorCores stay busy.
        steps = pl.cdiv(N, tile_n)
        if steps % 2:
            tile_n = max(chunk, _round_up(pl.cdiv(N, steps + 1), chunk))
    n_pad = _round_up(N, tile_n)
    if n_pad != N:
        ids = jnp.pad(ids, ((0, n_pad - N), (0, 0)))            # id 0 == padding char

    kernel = _make_char_cnn_kernel(K, Vp, L, chunk, F)
    stacked = fused_table.reshape(K * Vp, Fp)                   # (K*Vp, Fp)

    out = pl.pallas_call(
        kernel,
        out_shape=jax.ShapeDtypeStruct((n_pad, F), jnp.float32),
        grid_spec=pltpu.PrefetchScalarGridSpec(
            num_scalar_prefetch=0,
            grid=(n_pad // tile_n,),
            in_specs=[
                pl.BlockSpec((tile_n, L), lambda i: (i, 0)),
                pl.BlockSpec((K * Vp, Fp), lambda i: (0, 0)),   # resident weights
            ],
            out_specs=pl.BlockSpec((tile_n, F), lambda i: (i, 0)),
        ),
        compiler_params=pltpu.CompilerParams(
            dimension_semantics=("parallel",)),
    )(ids, stacked)
    return out if n_pad == N else out[:N]


def character_embedding_forward(inputs, emb_table, conv_w, *, tile_n=512, chunk=32,
                                table_dtype=jnp.bfloat16):
    """inputs: (B,H,W,S,L) int ids; emb_table: (V, 30) f32; conv_w: (F, 30, K) f32."""
    B, H, W, S, L = inputs.shape
    F = conv_w.shape[0]
    ids = inputs.reshape(B * H * W * S, L).astype(jnp.int32)
    fused = build_fused_table(emb_table, conv_w, table_dtype=table_dtype)
    out = char_cnn_pallas(ids, fused, F, tile_n=tile_n, chunk=chunk)  # (N, F) f32
    # TODO(synk): only the default single ngram_filter_size (3,) is implemented;
    # multiple sizes would be one fused table + kernel call per size, concatenated.
    return out.reshape(B, H, W, S, F)


if __name__ == "__main__":
    key = jax.random.PRNGKey(0)
    k_ids, k_emb, k_w = jax.random.split(key, 3)

    B, H, W, S, L = 2, 2, 2, 4, 8   # N = 32 tokens, char_length = 8
    K = NGRAM_FILTER_SIZES[0]
    inputs = jax.random.randint(k_ids, (B, H, W, S, L), 0, CHAR_VOCAB, dtype=jnp.int32)

    emb_table = jax.random.normal(k_emb, (CHAR_VOCAB, CHAR_EMB_DIM), jnp.float32)
    emb_table = emb_table.at[0].set(0.0)                       # padding_idx=0
    conv_w = jax.random.normal(
        k_w, (NUM_FILTERS, CHAR_EMB_DIM, K), jnp.float32) * 0.1

    out = character_embedding_forward(inputs, emb_table, conv_w)
    out = jax.block_until_ready(out)
    assert out.shape == (B, H, W, S, CV_DIM), out.shape

    N = B * H * W * S
    ids = inputs.reshape(N, L)
    lout = L - K + 1

    # Check 1 (tight): exact gather from the SAME quantized fused table -- verifies
    # the kernel's windowed one-hot / stacked matmul / max pipeline is (near) exact.
    fused_q = build_fused_table(emb_table, conv_w).astype(jnp.float32)   # (K, Vp, Fp)
    win = jnp.zeros((N, lout, fused_q.shape[-1]), jnp.float32)
    for k in range(K):
        win = win + fused_q[k][ids[:, k:k + lout]]             # (N, lout, Fp)
    ref_q = jnp.max(jnp.maximum(win, 0.0), axis=1)[:, :CV_DIM].reshape(
        B, H, W, S, CV_DIM)
    assert jnp.allclose(out, ref_q, atol=1e-5, rtol=1e-5), \
        float(jnp.max(jnp.abs(out - ref_q)))

    # Check 2 (loose): torch-faithful f32 path (embed -> conv -> relu -> max);
    # tolerance covers the bf16 quantization of the fused weight table.
    ce = jnp.take(emb_table, ids, axis=0)                      # (N, L, D)
    ref = jnp.zeros((N, lout, NUM_FILTERS), jnp.float32)
    for k in range(K):
        ref = ref + jnp.einsum('nld,fd->nlf', ce[:, k:k + lout, :], conv_w[:, :, k],
                               precision=jax.lax.Precision.HIGHEST)
    ref = jnp.max(jnp.maximum(ref, 0.0), axis=1).reshape(B, H, W, S, CV_DIM)
    assert jnp.allclose(out, ref, atol=5e-2, rtol=5e-2), \
        float(jnp.max(jnp.abs(out - ref)))

    print("KERNEL_OK")
</pallas_src>

<mosaic_0001>
module attributes {stable_mosaic.version = 11 : i64} {
  func.func @kernel(%arg0: i32, %arg1: memref<32x8xi32, #tpu.memory_space<vmem>>, %arg2: memref<384x64xbf16, #tpu.memory_space<vmem>>, %arg3: memref<32x50xf32, #tpu.memory_space<vmem>>) attributes {dimension_semantics = [#tpu.dimension_semantics<parallel>], iteration_bounds = array<i64: 1>, scalar_prefetch = 0 : i64, scratch_operands = 0 : i64, tpu.core_type = #tpu.core_type<tc>, window_params = [{transform_indices = @transform_0, window_bounds = array<i64: 32, 8>}, {pipeline_mode = #tpu.pipeline_mode<synchronous>, transform_indices = @transform_1, window_bounds = array<i64: 384, 64>}, {transform_indices = @transform_2, window_bounds = array<i64: 32, 50>}]} {
    %c0 = arith.constant 0 : index
    %c0_0 = arith.constant 0 : index
    %0 = vector.load %arg2[%c0, %c0_0] : memref<384x64xbf16, #tpu.memory_space<vmem>>, vector<384x64xbf16>
    %1 = tpu.iota {dimensions = array<i32: 1>} : vector<1x128xi32>
    %c0_i32 = arith.constant 0 : i32
    %c32_i32 = arith.constant 32 : i32
    %2 = arith.muli %c0_i32, %c32_i32 : i32
    %3 = tpu.assume_multiple %2, 32 : i32
    %4 = arith.index_cast %3 : i32 to index
    %c0_1 = arith.constant 0 : index
    %5 = vector.load %arg1[%4, %c0_1] : memref<32x8xi32, #tpu.memory_space<vmem>>, vector<32x8xi32>
    %6 = vector.extract_strided_slice %5 {offsets = [0, 0], sizes = [32, 1], strides = [1, 1]} : vector<32x8xi32> to vector<32x1xi32>
    %7 = vector.broadcast %6 : vector<32x1xi32> to vector<32x128xi32>
    %8 = vector.broadcast %1 : vector<1x128xi32> to vector<32x128xi32>
    %9 = arith.cmpi eq, %7, %8 : vector<32x128xi32>
    %10 = arith.extui %9 : vector<32x128xi1> to vector<32x128xi32>
    %11 = arith.sitofp %10 : vector<32x128xi32> to vector<32x128xf32>
    %12 = arith.truncf %11 : vector<32x128xf32> to vector<32x128xbf16>
    %13 = vector.extract_strided_slice %5 {offsets = [0, 1], sizes = [32, 1], strides = [1, 1]} : vector<32x8xi32> to vector<32x1xi32>
    %14 = vector.broadcast %13 : vector<32x1xi32> to vector<32x128xi32>
    %15 = vector.broadcast %1 : vector<1x128xi32> to vector<32x128xi32>
    %16 = arith.cmpi eq, %14, %15 : vector<32x128xi32>
    %17 = arith.extui %16 : vector<32x128xi1> to vector<32x128xi32>
    %18 = arith.sitofp %17 : vector<32x128xi32> to vector<32x128xf32>
    %19 = arith.truncf %18 : vector<32x128xf32> to vector<32x128xbf16>
    %20 = vector.extract_strided_slice %5 {offsets = [0, 2], sizes = [32, 1], strides = [1, 1]} : vector<32x8xi32> to vector<32x1xi32>
    %21 = vector.broadcast %20 : vector<32x1xi32> to vector<32x128xi32>
    %22 = vector.broadcast %1 : vector<1x128xi32> to vector<32x128xi32>
    %23 = arith.cmpi eq, %21, %22 : vector<32x128xi32>
    %24 = arith.extui %23 : vector<32x128xi1> to vector<32x128xi32>
    %25 = arith.sitofp %24 : vector<32x128xi32> to vector<32x128xf32>
    %26 = arith.truncf %25 : vector<32x128xf32> to vector<32x128xbf16>
    %27 = vector.extract_strided_slice %5 {offsets = [0, 3], sizes = [32, 1], strides = [1, 1]} : vector<32x8xi32> to vector<32x1xi32>
    %28 = vector.broadcast %27 : vector<32x1xi32> to vector<32x128xi32>
    %29 = vector.broadcast %1 : vector<1x128xi32> to vector<32x128xi32>
    %30 = arith.cmpi eq, %28, %29 : vector<32x128xi32>
    %31 = arith.extui %30 : vector<32x128xi1> to vector<32x128xi32>
    %32 = arith.sitofp %31 : vector<32x128xi32> to vector<32x128xf32>
    %33 = arith.truncf %32 : vector<32x128xf32> to vector<32x128xbf16>
    %34 = vector.extract_strided_slice %5 {offsets = [0, 4], sizes = [32, 1], strides = [1, 1]} : vector<32x8xi32> to vector<32x1xi32>
    %35 = vector.broadcast %34 : vector<32x1xi32> to vector<32x128xi32>
    %36 = vector.broadcast %1 : vector<1x128xi32> to vector<32x128xi32>
    %37 = arith.cmpi eq, %35, %36 : vector<32x128xi32>
    %38 = arith.extui %37 : vector<32x128xi1> to vector<32x128xi32>
    %39 = arith.sitofp %38 : vector<32x128xi32> to vector<32x128xf32>
    %40 = arith.truncf %39 : vector<32x128xf32> to vector<32x128xbf16>
    %41 = vector.extract_strided_slice %5 {offsets = [0, 5], sizes = [32, 1], strides = [1, 1]} : vector<32x8xi32> to vector<32x1xi32>
    %42 = vector.broadcast %41 : vector<32x1xi32> to vector<32x128xi32>
    %43 = vector.broadcast %1 : vector<1x128xi32> to vector<32x128xi32>
    %44 = arith.cmpi eq, %42, %43 : vector<32x128xi32>
    %45 = arith.extui %44 : vector<32x128xi1> to vector<32x128xi32>
    %46 = arith.sitofp %45 : vector<32x128xi32> to vector<32x128xf32>
    %47 = arith.truncf %46 : vector<32x128xf32> to vector<32x128xbf16>
    %48 = vector.extract_strided_slice %5 {offsets = [0, 6], sizes = [32, 1], strides = [1, 1]} : vector<32x8xi32> to vector<32x1xi32>
    %49 = vector.broadcast %48 : vector<32x1xi32> to vector<32x128xi32>
    %50 = vector.broadcast %1 : vector<1x128xi32> to vector<32x128xi32>
    %51 = arith.cmpi eq, %49, %50 : vector<32x128xi32>
    %52 = arith.extui %51 : vector<32x128xi1> to vector<32x128xi32>
    %53 = arith.sitofp %52 : vector<32x128xi32> to vector<32x128xf32>
    %54 = arith.truncf %53 : vector<32x128xf32> to vector<32x128xbf16>
    %55 = vector.extract_strided_slice %5 {offsets = [0, 7], sizes = [32, 1], strides = [1, 1]} : vector<32x8xi32> to vector<32x1xi32>
    %56 = vector.broadcast %55 : vector<32x1xi32> to vector<32x128xi32>
    %57 = vector.broadcast %1 : vector<1x128xi32> to vector<32x128xi32>
    %58 = arith.cmpi eq, %56, %57 : vector<32x128xi32>
    %59 = arith.extui %58 : vector<32x128xi1> to vector<32x128xi32>
    %60 = arith.sitofp %59 : vector<32x128xi32> to vector<32x128xf32>
    %61 = arith.truncf %60 : vector<32x128xf32> to vector<32x128xbf16>
    %62 = tpu.concatenate %12, %19, %26 in 1 : vector<32x128xbf16>, vector<32x128xbf16>, vector<32x128xbf16> -> vector<32x384xbf16>
    %63 = tpu.concatenate %19, %26, %33 in 1 : vector<32x128xbf16>, vector<32x128xbf16>, vector<32x128xbf16> -> vector<32x384xbf16>
    %64 = tpu.concatenate %26, %33, %40 in 1 : vector<32x128xbf16>, vector<32x128xbf16>, vector<32x128xbf16> -> vector<32x384xbf16>
    %65 = tpu.concatenate %33, %40, %47 in 1 : vector<32x128xbf16>, vector<32x128xbf16>, vector<32x128xbf16> -> vector<32x384xbf16>
    %66 = tpu.concatenate %40, %47, %54 in 1 : vector<32x128xbf16>, vector<32x128xbf16>, vector<32x128xbf16> -> vector<32x384xbf16>
    %67 = tpu.concatenate %47, %54, %61 in 1 : vector<32x128xbf16>, vector<32x128xbf16>, vector<32x128xbf16> -> vector<32x384xbf16>
    %68 = tpu.concatenate %62, %63, %64, %65, %66, %67 in 0 : vector<32x384xbf16>, vector<32x384xbf16>, vector<32x384xbf16>, vector<32x384xbf16>, vector<32x384xbf16>, vector<32x384xbf16> -> vector<192x384xbf16>
    %cst = arith.constant dense<0.000000e+00> : vector<192x64xf32>
    %69 = tpu.matmul %68, %0, %cst {dimension_numbers = #tpu.dot_dimension_numbers<[1], [0], [0], [1], [0, 0, 1, 1], [], []>} : vector<192x384xbf16>, vector<384x64xbf16>, vector<192x64xf32> -> vector<192x64xf32>
    %70 = vector.shape_cast %69 : vector<192x64xf32> to vector<6x32x64xf32>
    %cst_2 = arith.constant dense<0xFF800000> : vector<32x64xf32>
    %71 = vector.multi_reduction <maximumf>, %70, %cst_2 [0] : vector<6x32x64xf32> to vector<32x64xf32>
    %cst_3 = arith.constant 0.000000e+00 : f32
    %72 = vector.broadcast %cst_3 : f32 to vector<32x64xf32>
    %73 = arith.maximumf %71, %72 : vector<32x64xf32>
    %74 = vector.extract_strided_slice %73 {offsets = [0, 0], sizes = [32, 50], strides = [1, 1]} : vector<32x64xf32> to vector<32x50xf32>
    %75 = arith.index_cast %3 : i32 to index
    %c0_4 = arith.constant 0 : index
    %76 = vector.load %arg3[%75, %c0_4] : memref<32x50xf32, #tpu.memory_space<vmem>>, vector<32x50xf32>
    tpu.vector_store %arg3[%75, %c0_4], %74 {strides = array<i32>} : memref<32x50xf32, #tpu.memory_space<vmem>>, vector<32x50xf32>,
    %c1_i32 = arith.constant 1 : i32
    return
  }
  func.func @transform_0(%arg0: i32) -> (i32, i32) {
    %c0_i32 = arith.constant 0 : i32
    %c0_i32_0 = arith.constant 0 : i32
    return %arg0, %c0_i32 : i32, i32
  }
  func.func @transform_1(%arg0: i32) -> (i32, i32) {
    %c0_i32 = arith.constant 0 : i32
    %c0_i32_0 = arith.constant 0 : i32
    %c0_i32_1 = arith.constant 0 : i32
    return %c0_i32, %c0_i32_0 : i32, i32
  }
  func.func @transform_2(%arg0: i32) -> (i32, i32) {
    %c0_i32 = arith.constant 0 : i32
    %c0_i32_0 = arith.constant 0 : i32
    return %arg0, %c0_i32 : i32, i32
  }
}

</mosaic_0001>

<bundles_post_ra>
// kernel: tpu_custom_call.1
= control target key start
LH: loop header
LB: loop body
LE: loop exit
PB: predicated region body
PF: predicated region fallthrough
CT: control target
= control target key end

     0   :  { %v1100_v1 = vmov 1   ;;  %v1101_v2 = vmov 0   ;;  %v1102_v19 = vmov 2   ;;  %v1103_v24 = vmov 3   ;;  %s1479_s0 = inlined_call_operand.vmem [shape: s32[32,8], index: 0, kind: input, shape index: {}]   ;;  %s1480_s1 = inlined_call_operand.vmem [shape: bf16[384,64], index: 1, kind: input, shape index: {}]   ;;  %s1481_s2 = inlined_call_operand.hbm [shape: f32[32,50], index: 2, kind: output, shape index: {}]  }
   0x1   :  { %v1130_v0 = vld [vmem:[%s1479_s0] sm:$0xff]  ;;  %1035 = vset.pattern.permute.xlu0 %v1100_v1  ;;  %1036 = vset.pattern.permute.xlu1 %v1101_v2  ;;  %v1135_v3 = vld [vmem:[%s1479_s0 + $0x8] sm:$0xff]  ;;  %v1151_v7 = vld [vmem:[%s1479_s0 + $0x10] sm:$0xff] }
   0x2   :  { %v1052_v4 = vld [vmem:[%s1480_s1 + $0x40] sm:$0xff]   ;;  %68 = vperm.xlu1 %1036, %v1130_v0   ;;  %94 = vperm.xlu0 %1035, %v1130_v0   ;;  %v1054_v6 = vld [vmem:[%s1480_s1 + $0x48] sm:$0xff]   ;;  %v1056_v9 = vld [vmem:[%s1480_s1 + $0x50] sm:$0xff]  }
   0x3   :  { %v1053_v5 = vld [vmem:[%s1480_s1] sm:$0xff]   ;;  %875 = vmatprep.subr.bf16.mxu0 %v1052_v4  ;;  %v1055_v8 = vld [vmem:[%s1480_s1 + $0x8] sm:$0xff]   ;;  %v1164_v10 = vld [vmem:[%s1479_s0 + $0x18] sm:$0xff] }
   0x4   :  { %876 = vmatpush3.bf16.msra.mxu0 %v1053_v5  ;;  %v1057_v11 = vld [vmem:[%s1480_s1 + $0x10] sm:$0xff]   ;;  %v1058_v12 = vld [vmem:[%s1480_s1 + $0x58] sm:$0xff]   ;;  %v1060_v14 = vld [vmem:[%s1480_s1 + $0x60] sm:$0xff]  }
   0x5   :  { %877 = vmatprep.subr.bf16.mxu0 %v1054_v6  ;;  %v1059_v13 = vld [vmem:[%s1480_s1 + $0x18] sm:$0xff]   ;;  %v1064_v15 = vld [vmem:[%s1480_s1 + $0x80] sm:$0xff]   ;;  %v1067_v17 = vld [vmem:[%s1480_s1 + $0x88] sm:$0xff]  }
   0x6   :  { %71 = vperm.xlu1 %1036, %v1135_v3   ;;  %97 = vperm.xlu0 %1035, %v1135_v3   ;;  %v1061_v16 = vld [vmem:[%s1480_s1 + $0x20] sm:$0xff]   ;;  %v1062_v18 = vld [vmem:[%s1480_s1 + $0x68] sm:$0xff]   ;;  %v1070_v21 = vld [vmem:[%s1480_s1 + $0x90] sm:$0xff]  }
   0x7   :  { %983 = vmatprep.subr.bf16.mxu1 %v1064_v15  ;;  %v1063_v20 = vld [vmem:[%s1480_s1 + $0x28] sm:$0xff]   ;;  %v1065_v22 = vld [vmem:[%s1480_s1 + $0x70] sm:$0xff]   ;;  %v1071_v23 = vld [vmem:[%s1480_s1 + $0x98] sm:$0xff]  }
   0x8   :  { %878 = vmatpush3.bf16.msra.mxu0 %v1055_v8  ;;  %984 = vmatpush3.bf16.msra.mxu1 %v1064_v15 }
   0x9   :  { %879 = vmatprep.subr.bf16.mxu0 %v1056_v9  ;;  %985 = vmatprep.subr.bf16.mxu1 %v1067_v17 }
   0xa   :  { %1037 = vset.pattern.permute.xlu1 %v1100_v1  ;;  %100 = vperm.xlu0 %1035, %v1151_v7  }
   0xb   :  { %103 = vperm.xlu1 %1037, %v1164_v10  }
   0xc   :  { %880 = vmatpush3.bf16.msra.mxu0 %v1057_v11  ;;  %986 = vmatpush3.bf16.msra.mxu1 %v1067_v17 }
   0xd   :  { %881 = vmatprep.subr.bf16.mxu0 %v1058_v12  ;;  %987 = vmatprep.subr.bf16.mxu1 %v1070_v21 }
   0xe   :  { %1038 = vset.pattern.permute.xlu0 %v1101_v2 }
   0xf   :  { %1039 = vset.pattern.permute.xlu1 %v1101_v2  ;;  %74 = vperm.xlu0 %1038, %v1151_v7  }
  0x10   :  { %77 = vperm.xlu1 %1039, %v1164_v10   ;;  %882 = vmatpush3.bf16.msra.mxu0 %v1059_v13 }
  0x11   :  { %883 = vmatprep.subr.bf16.mxu0 %v1060_v14 }
  0x13   :  { %1041 = vset.pattern.permute.xlu0 %v1102_v19 }
  0x14   :  { %1040 = vset.pattern.permute.xlu1 %v1102_v19  ;;  %123 = vperm.xlu0 %1041, %v1135_v3  }
  0x15   :  { %120 = vperm.xlu1 %1040, %v1130_v0   ;;  %884 = vmatpush3.bf16.msra.mxu0 %v1061_v16 }
  0x16   :  { %885 = vmatprep.subr.bf16.mxu0 %v1062_v18 }
  0x18   :  { %1042 = vset.pattern.permute.xlu0 %v1103_v24 }
  0x19   :  { %126 = vperm.xlu1 %1040, %v1151_v7   ;;  %146 = vperm.xlu0 %1042, %v1130_v0  }
  0x1a   :  { %7 = vsyncpa [#allocation3], 0  ;;  %886 = vmatpush3.bf16.msra.mxu0 %v1063_v20  ;;  %v1066_v25 = vld [vmem:[%s1480_s1 + $0x30] sm:$0xff]   ;;  %988 = vmatpush3.bf16.msra.mxu1 %v1070_v21  ;;  %v1068_v26 = vld [vmem:[%s1480_s1 + $0x78] sm:$0xff]   ;;  %v1104_v30 = vmov 4   ;;  %v1105_v32 = vmov 5   ;;  %v61_v36 = vlaneseq }
  0x1b   :  { %887 = vmatprep.subr.bf16.mxu0 %v1065_v22  ;;  %989 = vmatprep.subr.bf16.mxu1 %v1071_v23  ;;  %v1072_v27 = vld [vmem:[%s1480_s1 + $0xa0] sm:$0xff]   ;;  %v1069_v28 = vld [vmem:[%s1480_s1 + $0x38] sm:$0xff]   ;;  %v1073_v29 = vld [vmem:[%s1480_s1 + $0xa8] sm:$0xff]   ;;  %v1106_v34 = vmov 6   ;;  %v1107_v35 = vmov 7  }
  0x1c   :  { %v1074_v31 = vld [vmem:[%s1480_s1 + $0xb0] sm:$0xff]   ;;  %v1075_v33 = vld [vmem:[%s1480_s1 + $0xb8] sm:$0xff]   ;;  %v1251_v39 = vand.u32 127, %v61_v36  ;;  %v1108_v43 = vmov 1.0|1.0   ;;  %s1109_s1 = smov [#allocation2]  }
  0x1d   :  { %129 = vperm.xlu1 %1040, %v1164_v10   ;;  %155 = vperm.xlu0 %1042, %v1164_v10   ;;  %s736_s7 = sshll.u32 %s1109_s1, 4  ;;  %s737_s7 = int_to_ptr.vmem [resolvable:$true] %s736_s7 }
  0x1e   :  { %888 = vmatpush3.bf16.msra.mxu0 %v1066_v25  ;;  %990 = vmatpush3.bf16.msra.mxu1 %v1071_v23  ;;  %s1076_s8 = scalar_lea.vmem %s737_s7, 512  ;;  %p1081_p1 = scmp.lt.s32.totalorder %s737_s7, %s737_s7 }
  0x1f   :  { %889 = vmatprep.subr.bf16.mxu0 %v1068_v26  ;;  %991 = vmatprep.subr.bf16.mxu1 %v1072_v27  ;;  %p1077_p0 = scmp.ne.s32.totalorder %s737_s7, %s1076_s8  ;;  %p1082_p2 = scmp.lt.s32.totalorder %s1076_s8, %s1076_s8 }
  0x21   :  { %1043 = vset.pattern.permute.xlu1 %v1103_v24  ;;  %1045 = vset.pattern.permute.xlu0 %v1104_v30  ;;  %p1083_p3 = por %p1082_p2, %p1081_p1 }
  0x22   :  { %149 = vperm.xlu1 %1043, %v1135_v3   ;;  %175 = vperm.xlu0 %1045, %v1135_v3  }
  0x23   :  { %890 = vmatpush3.bf16.msra.mxu0 %v1069_v28  ;;  %992 = vmatpush3.bf16.msra.mxu1 %v1072_v27  ;;  %p1084_p4 = pnand %p1083_p3, %p1077_p0 }
  0x24   :  { %993 = vmatprep.subr.bf16.mxu1 %v1073_v29 }
  0x26   :  { %152 = vperm.xlu1 %1043, %v1151_v7   ;;  %1046 = vset.pattern.permute.xlu0 %v1105_v32 }
  0x27   :  { %198 = vperm.xlu0 %1046, %v1130_v0   ;;  %994 = vmatpush3.bf16.msra.mxu1 %v1073_v29 }
  0x28   :  { %995 = vmatprep.subr.bf16.mxu1 %v1074_v31 }
  0x2a   :  { %1044 = vset.pattern.permute.xlu1 %v1104_v30 }
  0x2b   :  { %172 = vperm.xlu1 %1044, %v1130_v0   ;;  %207 = vperm.xlu0 %1046, %v1164_v10  }
  0x2c   :  { %996 = vmatpush3.bf16.msra.mxu1 %v1074_v31 }
  0x2d   :  { %997 = vmatprep.subr.bf16.mxu1 %v1075_v33 }
  0x2f   :  { %178 = vperm.xlu1 %1044, %v1151_v7   ;;  %1049 = vset.pattern.permute.xlu0 %v1106_v34 }
  0x30   :  { %227 = vperm.xlu0 %1049, %v1135_v3   ;;  %998 = vmatpush3.bf16.msra.mxu1 %v1075_v33 }
  0x33   :  { %181 = vperm.xlu1 %1044, %v1164_v10  }
  0x34   :  { %1050 = vset.pattern.permute.xlu0 %v1107_v35 }
  0x35   :  { %250 = vperm.xlu0 %1050, %v1130_v0  }
  0x37   :  { %1047 = vset.pattern.permute.xlu1 %v1105_v32 }
  0x38   :  { %201 = vperm.xlu1 %1047, %v1135_v3  }
  0x39   :  { %259 = vperm.xlu0 %1050, %v1164_v10  }
  0x3c   :  { %204 = vperm.xlu1 %1047, %v1151_v7  }
  0x40   :  { %1048 = vset.pattern.permute.xlu1 %v1106_v34 }
  0x41   :  { %224 = vperm.xlu1 %1048, %v1130_v0  }
  0x45   :  { %230 = vperm.xlu1 %1048, %v1151_v7  }
  0x49   :  { %233 = vperm.xlu1 %1048, %v1164_v10  }
  0x4d   :  { %1051 = vset.pattern.permute.xlu1 %v1107_v35 }
  0x4e   :  { %253 = vperm.xlu1 %1051, %v1135_v3  }
  0x52   :  { %256 = vperm.xlu1 %1051, %v1151_v7  }
  0x81   :  { %v69_v37 = vpop.permute.xlu1 %68  ;;  %v95_v38 = vpop.permute.xlu0 %94 }
  0x82   :  { %vm79_vm0 = vcmp.eq.s32.totalorder %v69_v37, %v1251_v39  ;;  %vm105_vm3 = vcmp.eq.s32.totalorder %v95_v38, %v1251_v39 }
  0x85   :  { %v72_v40 = vpop.permute.xlu1 %71  ;;  %v98_v41 = vpop.permute.xlu0 %97 }
  0x86   :  { %vm80_vm1 = vcmp.eq.s32.totalorder %v72_v40, %v1251_v39  ;;  %vm106_vm2 = vcmp.eq.s32.totalorder %v98_v41, %v1251_v39 }
  0x87   :  { %vm805_vm4 = vmpackc.low %vm80_vm1, %vm79_vm0 }
  0x88   :  { %vm1257_vm5 = vmpackc.low %vm106_vm2, %vm105_vm3 }
  0x89   :  { %804 = vmatprep.mubr.msk.bf16.mxu0 %vm1257_vm5, %v1108_v43  ;;  %v101_v44 = vpop.permute.xlu0 %100 }
  0x8a   :  { %vm107_vm6 = vcmp.eq.s32.totalorder %v101_v44, %v1251_v39  ;;  %806 = vmatmul.mubr.msk.bf16.vlgmr.msra.gmra.mrb[0].mxu0 %vm805_vm4, %v1108_v43  ;;  %v104_v45 = vpop.permute.xlu1 %103 }
  0x8b   :  { %vm108_vm7 = vcmp.eq.s32.totalorder %v104_v45, %v1251_v39 }
  0x8c   :  { %vm1267_vm8 = vmpackc.low %vm108_vm7, %vm107_vm6 }
  0x8d   :  { %808 = vmatprep.mubr.msk.bf16.mxu0 %vm1267_vm8, %v1108_v43 }
  0x8e   :  { %v75_v47 = vpop.permute.xlu0 %74 }
  0x8f   :  { %v78_v48 = vpop.permute.xlu1 %77  ;;  %vm81_vm9 = vcmp.eq.s32.totalorder %v75_v47, %v1251_v39 }
  0x90   :  { %vm82_vm10 = vcmp.eq.s32.totalorder %v78_v48, %v1251_v39 }
  0x91   :  { %vm809_vm11 = vmpackc.low %vm82_vm10, %vm81_vm9 }
  0x92   :  { %810 = vmatmul.mubr.msk.bf16.gmra.mrb[4].mxu0 %vm809_vm11, %v1108_v43 }
  0x93   :  { %v124_v49 = vpop.permute.xlu0 %123 }
  0x94   :  { %v121_v50 = vpop.permute.xlu1 %120  ;;  %vm132_vm12 = vcmp.eq.s32.totalorder %v124_v49, %v1251_v39 }
  0x95   :  { %vm131_vm13 = vcmp.eq.s32.totalorder %v121_v50, %v1251_v39 }
  0x96   :  { %vm1279_vm14 = vmpackc.low %vm132_vm12, %vm131_vm13 }
  0x97   :  { %812 = vmatprep.mubr.msk.bf16.mxu0 %vm1279_vm14, %v1108_v43  ;;  %999 = vmatprep.mubr.msk.bf16.mxu1 %vm1279_vm14, %v1108_v43 }
  0x98   :  { %v127_v52 = vpop.permute.xlu1 %126  ;;  %v147_v53 = vpop.permute.xlu0 %146 }
  0x99   :  { %vm133_vm15 = vcmp.eq.s32.totalorder %v127_v52, %v1251_v39  ;;  %vm157_vm2 = vcmp.eq.s32.totalorder %v147_v53, %v1251_v39 }
  0x9a   :  { %814 = vmatmul.mubr.msk.bf16.gmra.mrb[8].mxu0 %vm1257_vm5, %v1108_v43 }
  0x9c   :  { %v130_v54 = vpop.permute.xlu1 %129  ;;  %v156_v57 = vpop.permute.xlu0 %155 }
  0x9d   :  { %vm134_vm0 = vcmp.eq.s32.totalorder %v130_v54, %v1251_v39  ;;  %vm160_vm5 = vcmp.eq.s32.totalorder %v156_v57, %v1251_v39 }
  0x9e   :  { %vm1294_vm1 = vmpackc.low %vm134_vm0, %vm133_vm15 }
  0x9f   :  { %816 = vmatprep.mubr.msk.bf16.mxu0 %vm1294_vm1, %v1108_v43  ;;  %1000 = vmatmul.mubr.msk.bf16.vlgmr.msra.gmra.mrb[0].mxu1 %vm1294_vm1, %v1108_v43 }
  0xa1   :  { %v150_v56 = vpop.permute.xlu1 %149  ;;  %v176_v60 = vpop.permute.xlu0 %175 }
  0xa2   :  { %vm158_vm3 = vcmp.eq.s32.totalorder %v150_v56, %v1251_v39  ;;  %818 = vmatmul.mubr.msk.bf16.gmra.mrb[12].mxu0 %vm1267_vm8, %v1108_v43  ;;  %vm184_vm8 = vcmp.eq.s32.totalorder %v176_v60, %v1251_v39 }
  0xa3   :  { %vm1309_vm4 = vmpackc.low %vm158_vm3, %vm157_vm2 }
  0xa4   :  { %1003 = vmatprep.mubr.msk.bf16.mxu1 %vm1309_vm4, %v1108_v43  ;;  %820 = vmatprep.mubr.msk.bf16.mxu0 %vm1309_vm4, %v1108_v43 }
  0xa5   :  { %v153_v59 = vpop.permute.xlu1 %152 }
  0xa6   :  { %vm159_vm6 = vcmp.eq.s32.totalorder %v153_v59, %v1251_v39  ;;  %v199_v1 = vpop.permute.xlu0 %198 }
  0xa7   :  { %vm1321_vm7 = vmpackc.low %vm160_vm5, %vm159_vm6 }
  0xa8   :  { %1004 = vmatmul.mubr.msk.bf16.gmra.mrb[4].mxu1 %vm1321_vm7, %v1108_v43 }
  0xaa   :  { %v173_v62 = vpop.permute.xlu1 %172  ;;  %822 = vmatmul.mubr.msk.bf16.gmra.mrb[16].mxu0 %vm1279_vm14, %v1108_v43  ;;  %vm209_vm14 = vcmp.eq.s32.totalorder %v199_v1, %v1251_v39  ;;  %v208_v5 = vpop.permute.xlu0 %207 }
  0xab   :  { %vm183_vm9 = vcmp.eq.s32.totalorder %v173_v62, %v1251_v39  ;;  %824 = vmatprep.mubr.msk.bf16.mxu0 %vm1321_vm7, %v1108_v43 }
  0xac   :  { %vm1336_vm10 = vmpackc.low %vm184_vm8, %vm183_vm9 }
  0xad   :  { %1007 = vmatprep.mubr.msk.bf16.mxu1 %vm1336_vm10, %v1108_v43 }
  0xae   :  { %v179_v0 = vpop.permute.xlu1 %178 }
  0xaf   :  { %vm185_vm11 = vcmp.eq.s32.totalorder %v179_v0, %v1251_v39  ;;  %v228_v8 = vpop.permute.xlu0 %227 }
  0xb2   :  { %v182_v2 = vpop.permute.xlu1 %181  ;;  %826 = vmatmul.mubr.msk.bf16.gmra.mrb[20].mxu0 %vm1294_vm1, %v1108_v43  ;;  %vm212_vm1 = vcmp.eq.s32.totalorder %v208_v5, %v1251_v39 }
  0xb3   :  { %vm186_vm12 = vcmp.eq.s32.totalorder %v182_v2, %v1251_v39  ;;  %828 = vmatprep.mubr.msk.bf16.mxu0 %vm1336_vm10, %v1108_v43 }
  0xb4   :  { %vm1351_vm13 = vmpackc.low %vm186_vm12, %vm185_vm11  ;;  %v251_v13 = vpop.permute.xlu0 %250 }
  0xb5   :  { %1008 = vmatmul.mubr.msk.bf16.gmra.mrb[8].mxu1 %vm1351_vm13, %v1108_v43  ;;  %vm261_vm11 = vcmp.eq.s32.totalorder %v251_v13, %v1251_v39 }
  0xb7   :  { %v202_v4 = vpop.permute.xlu1 %201 }
  0xb8   :  { %vm210_vm15 = vcmp.eq.s32.totalorder %v202_v4, %v1251_v39  ;;  %v260_v17 = vpop.permute.xlu0 %259 }
  0xb9   :  { %vm1360_vm0 = vmpackc.low %vm210_vm15, %vm209_vm14  ;;  %vm264_vm15 = vcmp.eq.s32.totalorder %v260_v17, %v1251_v39 }
  0xba   :  { %830 = vmatmul.mubr.msk.bf16.gmra.mrb[24].mxu0 %vm1309_vm4, %v1108_v43  ;;  %1011 = vmatprep.mubr.msk.bf16.mxu1 %vm1360_vm0, %v1108_v43  ;;  %vm236_vm4 = vcmp.eq.s32.totalorder %v228_v8, %v1251_v39 }
  0xbb   :  { %v205_v7 = vpop.permute.xlu1 %204  ;;  %832 = vmatprep.mubr.msk.bf16.mxu0 %vm1351_vm13, %v1108_v43 }
  0xbc   :  { %vm211_vm2 = vcmp.eq.s32.totalorder %v205_v7, %v1251_v39 }
  0xbd   :  { %vm1375_vm3 = vmpackc.low %vm212_vm1, %vm211_vm2 }
  0xbe   :  { %1012 = vmatmul.mubr.msk.bf16.gmra.mrb[12].mxu1 %vm1375_vm3, %v1108_v43 }
  0xc0   :  { %v225_v10 = vpop.permute.xlu1 %224 }
  0xc1   :  { %vm235_vm5 = vcmp.eq.s32.totalorder %v225_v10, %v1251_v39 }
  0xc2   :  { %834 = vmatmul.mubr.msk.bf16.gmra.mrb[28].mxu0 %vm1321_vm7, %v1108_v43  ;;  %vm1387_vm6 = vmpackc.low %vm236_vm4, %vm235_vm5 }
  0xc3   :  { %836 = vmatprep.mubr.msk.bf16.mxu0 %vm1360_vm0, %v1108_v43  ;;  %1015 = vmatprep.mubr.msk.bf16.mxu1 %vm1387_vm6, %v1108_v43 }
  0xc4   :  { %v231_v12 = vpop.permute.xlu1 %230 }
  0xc5   :  { %vm237_vm8 = vcmp.eq.s32.totalorder %v231_v12, %v1251_v39 }
  0xc8   :  { %v234_v14 = vpop.permute.xlu1 %233 }
  0xc9   :  { %vm238_vm9 = vcmp.eq.s32.totalorder %v234_v14, %v1251_v39 }
  0xca   :  { %vm1399_vm7 = vmpackc.low %vm238_vm9, %vm237_vm8  ;;  %838 = vmatmul.mubr.msk.bf16.gmra.mrb[32].mxu0 %vm1336_vm10, %v1108_v43 }
  0xcb   :  { %840 = vmatprep.mubr.msk.bf16.mxu0 %vm1375_vm3, %v1108_v43  ;;  %1016 = vmatmul.mubr.msk.bf16.gmra.mrb[16].mxu1 %vm1399_vm7, %v1108_v43 }
  0xcd   :  { %v254_v16 = vpop.permute.xlu1 %253 }
  0xce   :  { %vm262_vm12 = vcmp.eq.s32.totalorder %v254_v16, %v1251_v39 }
  0xcf   :  { %vm871_vm14 = vmpackc.low %vm262_vm12, %vm261_vm11 }
  0xd0   :  { %1019 = vmatprep.mubr.msk.bf16.mxu1 %vm871_vm14, %v1108_v43 }
  0xd1   :  { %v257_v18 = vpop.permute.xlu1 %256 }
  0xd2   :  { %842 = vmatmul.mubr.msk.bf16.gmra.mrb[36].mxu0 %vm1351_vm13, %v1108_v43  ;;  %vm263_vm10 = vcmp.eq.s32.totalorder %v257_v18, %v1251_v39  ;;  %vm677_vm13 = vcmask 523264  }
  0xd3   :  { %844 = vmatprep.mubr.msk.bf16.mxu0 %vm1387_vm6, %v1108_v43  ;;  %vm873_vm1 = vmpackc.low %vm264_vm15, %vm263_vm10 }
  0xd4   :  { %1020 = vmatmul.mubr.msk.bf16.gmra.mrb[20].mxu1 %vm873_vm1, %v1108_v43 }
  0xda   :  { %846 = vmatmul.mubr.msk.bf16.gmra.mrb[40].mxu0 %vm1360_vm0, %v1108_v43  ;;  %vm726_vm0 = vcmask 408576  }
  0xdb   :  { %848 = vmatprep.mubr.msk.bf16.mxu0 %vm1399_vm7, %v1108_v43 }
  0xe2   :  { %850 = vmatmul.mubr.msk.bf16.gmra.mrb[44].mxu0 %vm1375_vm3, %v1108_v43 }
 0x15d   :  { %v891_v19 = vpop.f32.mrb[0].mxu0 }
 0x15e   :  { %v892_v20 = vpop.f32.mrb[1].mxu0 }
 0x15f   :  { %v893_v21 = vadd.f32 %v892_v20, %v891_v19  ;;  %v894_v22 = vpop.f32.mrb[2].mxu0 }
 0x160   :  { %v895_v23 = vpop.f32.mrb[3].mxu0 }
 0x161   :  { %v896_v24 = vadd.f32 %v895_v23, %v894_v22 }
 0x165   :  { %v897_v25 = vpop.f32.mrb[4].mxu0 }
 0x166   :  { %v898_v26 = vpop.f32.mrb[5].mxu0 }
 0x167   :  { %v899_v27 = vadd.f32 %v898_v26, %v897_v25  ;;  %v900_v28 = vpop.f32.mrb[6].mxu0 }
 0x168   :  { %v901_v29 = vpop.f32.mrb[7].mxu0 }
 0x169   :  { %v902_v30 = vadd.f32 %v901_v29, %v900_v28 }
 0x16d   :  { %v903_v31 = vpop.f32.mrb[8].mxu0 }
 0x16e   :  { %v904_v32 = vpop.f32.mrb[9].mxu0 }
 0x16f   :  { %v905_v33 = vadd.f32 %v904_v32, %v903_v31  ;;  %v906_v34 = vpop.f32.mrb[10].mxu0 }
 0x170   :  { %v907_v35 = vpop.f32.mrb[11].mxu0 }
 0x171   :  { %v908_v36 = vadd.f32 %v907_v35, %v906_v34 }
 0x172   :  { %v1001_v37 = vpop.f32.mrb[0].mxu1 }
 0x173   :  { %v591_v38 = vadd.f32 %v1001_v37, %v899_v27  ;;  %v582_v39 = vpop.f32.mrb[1].mxu1 }
 0x174   :  { %v583_v40 = vadd.f32 %v893_v21, %v582_v39  ;;  %v1002_v41 = vpop.f32.mrb[2].mxu1 }
 0x175   :  { %v594_v42 = vadd.f32 %v1002_v41, %v902_v30  ;;  %v909_v43 = vpop.f32.mrb[12].mxu0  ;;  %v585_v44 = vpop.f32.mrb[3].mxu1  ;;  %v700_v57 = vsel %vm677_vm13, %v591_v38, -inf }
 0x176   :  { %v586_v45 = vadd.f32 %v896_v24, %v585_v44  ;;  %v910_v46 = vpop.f32.mrb[13].mxu0  ;;  %v678_v58 = vsel %vm677_vm13, %v583_v40, -inf }
 0x177   :  { %v911_v47 = vadd.f32 %v910_v46, %v909_v43  ;;  %v912_v48 = vpop.f32.mrb[14].mxu0  ;;  %v711_v4 = vsel %vm677_vm13, %v594_v42, -inf }
 0x178   :  { %v913_v49 = vpop.f32.mrb[15].mxu0  ;;  %v689_v8 = vsel %vm677_vm13, %v586_v45, -inf }
 0x179   :  { %v914_v50 = vadd.f32 %v913_v49, %v912_v48 }
 0x17b   :  { %v1005_v51 = vpop.f32.mrb[4].mxu1 }
 0x17c   :  { %v607_v52 = vadd.f32 %v1005_v51, %v911_v47  ;;  %v598_v53 = vpop.f32.mrb[5].mxu1 }
 0x17d   :  { %v599_v54 = vadd.f32 %v905_v33, %v598_v53  ;;  %v915_v55 = vpop.f32.mrb[16].mxu0  ;;  %v1006_v56 = vpop.f32.mrb[6].mxu1 }
 0x17e   :  { %v701_v59 = vsel %vm677_vm13, %v607_v52, -inf  ;;  %v610_v60 = vadd.f32 %v1006_v56, %v914_v50  ;;  %v916_v61 = vpop.f32.mrb[17].mxu0  ;;  %v601_v62 = vpop.f32.mrb[7].mxu1 }
 0x17f   :  { %v702_v63 = vmax.f32 %v700_v57, %v701_v59  ;;  %v679_v0 = vsel %vm677_vm13, %v599_v54, -inf  ;;  %v917_v1 = vadd.f32 %v916_v61, %v915_v55  ;;  %v602_v2 = vadd.f32 %v908_v36, %v601_v62  ;;  %v918_v3 = vpop.f32.mrb[18].mxu0 }
 0x180   :  { %v680_v5 = vmax.f32 %v678_v58, %v679_v0  ;;  %v712_v6 = vsel %vm677_vm13, %v610_v60, -inf  ;;  %v919_v7 = vpop.f32.mrb[19].mxu0 }
 0x181   :  { %v713_v9 = vmax.f32 %v711_v4, %v712_v6  ;;  %v690_v10 = vsel %vm677_vm13, %v602_v2, -inf  ;;  %v920_v11 = vadd.f32 %v919_v7, %v918_v3 }
 0x182   :  { %v691_v12 = vmax.f32 %v689_v8, %v690_v10 }
 0x185   :  { %v921_v13 = vpop.f32.mrb[20].mxu0 }
 0x186   :  { %v922_v14 = vpop.f32.mrb[21].mxu0 }
 0x187   :  { %v923_v15 = vadd.f32 %v922_v14, %v921_v13  ;;  %v924_v16 = vpop.f32.mrb[22].mxu0 }
 0x188   :  { %v925_v17 = vpop.f32.mrb[23].mxu0  ;;  %v1009_v18 = vpop.f32.mrb[8].mxu1 }
 0x189   :  { %v926_v19 = vadd.f32 %v925_v17, %v924_v16  ;;  %v623_v20 = vadd.f32 %v1009_v18, %v923_v15  ;;  %v614_v21 = vpop.f32.mrb[9].mxu1 }
 0x18a   :  { %v615_v22 = vadd.f32 %v917_v1, %v614_v21  ;;  %v1010_v23 = vpop.f32.mrb[10].mxu1 }
 0x18b   :  { %v703_v24 = vsel %vm677_vm13, %v623_v20, -inf  ;;  %v626_v25 = vadd.f32 %v1010_v23, %v926_v19  ;;  %v617_v26 = vpop.f32.mrb[11].mxu1 }
 0x18c   :  { %v1442_v27 = vmax.f32 %v702_v63, %v703_v24  ;;  %v681_v28 = vsel %vm677_vm13, %v615_v22, -inf  ;;  %v618_v29 = vadd.f32 %v920_v11, %v617_v26 }
 0x18d   :  { %v682_v30 = vmax.f32 %v680_v5, %v681_v28  ;;  %v714_v31 = vsel %vm677_vm13, %v626_v25, -inf  ;;  %v927_v32 = vpop.f32.mrb[24].mxu0 }
 0x18e   :  { %v1446_v33 = vmax.f32 %v713_v9, %v714_v31  ;;  %v692_v34 = vsel %vm677_vm13, %v618_v29, -inf  ;;  %v928_v35 = vpop.f32.mrb[25].mxu0 }
 0x18f   :  { %v693_v36 = vmax.f32 %v691_v12, %v692_v34  ;;  %v929_v37 = vadd.f32 %v928_v35, %v927_v32  ;;  %v930_v38 = vpop.f32.mrb[26].mxu0 }
 0x190   :  { %v931_v39 = vpop.f32.mrb[27].mxu0 }
 0x191   :  { %v932_v40 = vadd.f32 %v931_v39, %v930_v38  ;;  %v1013_v41 = vpop.f32.mrb[12].mxu1 }
 0x192   :  { %v630_v42 = vpop.f32.mrb[13].mxu1 }
 0x193   :  { %v631_v43 = vadd.f32 %v929_v37, %v630_v42  ;;  %v1014_v44 = vpop.f32.mrb[14].mxu1 }
 0x194   :  { %v633_v45 = vpop.f32.mrb[15].mxu1 }
 0x195   :  { %v683_v46 = vsel %vm677_vm13, %v631_v43, -inf  ;;  %v634_v47 = vadd.f32 %v932_v40, %v633_v45  ;;  %v933_v48 = vpop.f32.mrb[28].mxu0 }
 0x196   :  { %v684_v49 = vmax.f32 %v682_v30, %v683_v46  ;;  %v934_v50 = vpop.f32.mrb[29].mxu0 }
 0x197   :  { %v694_v51 = vsel %vm677_vm13, %v634_v47, -inf  ;;  %v935_v52 = vadd.f32 %v934_v50, %v933_v48  ;;  %v936_v53 = vpop.f32.mrb[30].mxu0 }
 0x198   :  { %v695_v54 = vmax.f32 %v693_v36, %v694_v51  ;;  %v937_v55 = vpop.f32.mrb[31].mxu0 }
 0x199   :  { %v639_v56 = vadd.f32 %v1013_v41, %v935_v52  ;;  %v938_v57 = vadd.f32 %v937_v55, %v936_v53 }
 0x19b   :  { %v705_v58 = vsel %vm677_vm13, %v639_v56, -inf  ;;  %v642_v59 = vadd.f32 %v1014_v44, %v938_v57 }
 0x19c   :  { %v706_v60 = vmax.f32 %v1442_v27, %v705_v58 }
 0x19d   :  { %v716_v61 = vsel %vm677_vm13, %v642_v59, -inf  ;;  %v939_v62 = vpop.f32.mrb[32].mxu0 }
 0x19e   :  { %v717_v63 = vmax.f32 %v1446_v33, %v716_v61  ;;  %v940_v0 = vpop.f32.mrb[33].mxu0  ;;  %v1017_v1 = vpop.f32.mrb[16].mxu1 }
 0x19f   :  { %v941_v2 = vadd.f32 %v940_v0, %v939_v62  ;;  %v942_v3 = vpop.f32.mrb[34].mxu0  ;;  %v646_v4 = vpop.f32.mrb[17].mxu1 }
 0x1a0   :  { %v943_v5 = vpop.f32.mrb[35].mxu0  ;;  %v1018_v6 = vpop.f32.mrb[18].mxu1 }
 0x1a1   :  { %v944_v7 = vadd.f32 %v943_v5, %v942_v3  ;;  %v647_v8 = vadd.f32 %v941_v2, %v646_v4  ;;  %v649_v9 = vpop.f32.mrb[19].mxu1 }
 0x1a3   :  { %v685_v10 = vsel %vm677_vm13, %v647_v8, -inf  ;;  %v650_v11 = vadd.f32 %v944_v7, %v649_v9 }
 0x1a4   :  { %v686_v12 = vmax.f32 %v684_v49, %v685_v10 }
 0x1a5   :  { %v696_v13 = vsel %vm677_vm13, %v650_v11, -inf  ;;  %v945_v14 = vpop.f32.mrb[36].mxu0 }
 0x1a6   :  { %v697_v15 = vmax.f32 %v695_v54, %v696_v13  ;;  %v946_v16 = vpop.f32.mrb[37].mxu0 }
 0x1a7   :  { %v947_v17 = vadd.f32 %v946_v16, %v945_v14  ;;  %v948_v18 = vpop.f32.mrb[38].mxu0  ;;  %v1021_v19 = vpop.f32.mrb[20].mxu1 }
 0x1a8   :  { %v949_v20 = vpop.f32.mrb[39].mxu0  ;;  %v662_v21 = vpop.f32.mrb[21].mxu1 }
 0x1a9   :  { %v655_v22 = vadd.f32 %v1017_v1, %v947_v17  ;;  %v950_v23 = vadd.f32 %v949_v20, %v948_v18  ;;  %v1022_v24 = vpop.f32.mrb[22].mxu1 }
 0x1aa   :  { %v665_v25 = vpop.f32.mrb[23].mxu1 }
 0x1ab   :  { %v707_v26 = vsel %vm677_vm13, %v655_v22, -inf  ;;  %v658_v27 = vadd.f32 %v1018_v6, %v950_v23 }
 0x1ac   :  { %v708_v28 = vmax.f32 %v706_v60, %v707_v26 }
 0x1ad   :  { %v718_v29 = vsel %vm677_vm13, %v658_v27, -inf  ;;  %v951_v30 = vpop.f32.mrb[40].mxu0 }
 0x1ae   :  { %v719_v31 = vmax.f32 %v717_v63, %v718_v29  ;;  %v952_v32 = vpop.f32.mrb[41].mxu0 }
 0x1af   :  { %v953_v33 = vadd.f32 %v952_v32, %v951_v30  ;;  %v954_v34 = vpop.f32.mrb[42].mxu0 }
 0x1b0   :  { %v955_v35 = vpop.f32.mrb[43].mxu0 }
 0x1b1   :  { %v956_v36 = vadd.f32 %v955_v35, %v954_v34  ;;  %v663_v37 = vadd.f32 %v953_v33, %v662_v21 }
 0x1b3   :  { %v687_v38 = vsel %vm677_vm13, %v663_v37, -inf  ;;  %v666_v39 = vadd.f32 %v956_v36, %v665_v25 }
 0x1b4   :  { %v688_v40 = vmax.f32 %v686_v12, %v687_v38 }
 0x1b5   :  { %v698_v41 = vsel %vm677_vm13, %v666_v39, -inf  ;;  %v957_v42 = vpop.f32.mrb[44].mxu0 }
 0x1b6   :  { %v722_v43 = vmax.f32 %v688_v40, 0.0  ;;  %v699_v44 = vmax.f32 %v697_v15, %v698_v41  ;;  %v958_v45 = vpop.f32.mrb[45].mxu0 }
 0x1b7   :  { %v959_v46 = vadd.f32 %v958_v45, %v957_v42  ;;  %v960_v47 = vpop.f32.mrb[46].mxu0 }
 0x1b8   :  { %727 = vst.msk [vmem:[#allocation2] sm:$0xff] %vm726_vm0, %v722_v43  ;;  %v723_v48 = vmax.f32 %v699_v44, 0.0  ;;  %v961_v49 = vpop.f32.mrb[47].mxu0 }
 0x1b9   :  { %v671_v50 = vadd.f32 %v1021_v19, %v959_v46  ;;  %v962_v51 = vadd.f32 %v961_v49, %v960_v47 }
 0x1ba   :  { %728 = vst.msk [vmem:[#allocation2 + $0x8] sm:$0xff] %vm726_vm0, %v723_v48 }
 0x1bb   :  { %v709_v52 = vsel %vm677_vm13, %v671_v50, -inf  ;;  %v674_v53 = vadd.f32 %v1022_v24, %v962_v51 }
 0x1bc   :  { %v710_v54 = vmax.f32 %v708_v28, %v709_v52 }
 0x1bd   :  { %v720_v55 = vsel %vm677_vm13, %v674_v53, -inf }
 0x1be   :  { %v724_v56 = vmax.f32 %v710_v54, 0.0  ;;  %v721_v57 = vmax.f32 %v719_v31, %v720_v55 }
 0x1c0   :  { %729 = vst.msk [vmem:[#allocation2 + $0x10] sm:$0xff] %vm726_vm0, %v724_v56  ;;  %v725_v58 = vmax.f32 %v721_v57, 0.0 }
 0x1c2   :  { %730 = vst.msk [vmem:[#allocation2 + $0x18] sm:$0xff] %vm726_vm0, %v725_v58 }
 0x1c3   :  { %1087 = shalt.err (!%p1084_p4)
}
 0x1c4   :  { %s1088_s11 = scalar_lea.hbm %s1481_s2, 512 }
 0x1c5   :  { %p1089_p5 = scmp.ne.s32.totalorder %s1481_s2, %s1088_s11  ;;  %p1092_p6 = scmp.lt.u32.totalorder %s1088_s11, %s1481_s2 }
 0x1c7   :  { %p1094_p7 = pnand %p1092_p6, %p1089_p5 }
 0x1c9   :  { %1097 = shalt.err (!%p1094_p7)
}
 0x1ca   :  { %s1110_s16 = smov 128   ;;  %s1111_s17 = smov 8  }
 0x1cb   :  { %742 = dma.vmem_to_hbm [thread:$0]  %s737_s7, 512, %s1481_s2, [#allocation3], %s1110_s16, %s1110_s16, %s1111_s17  }
 0x1cc   :  { %1098 = dma.done.wait [#allocation3], 512  }
 0x1cd   :  { %1099 = vsyncadd [#allocation3], 4294966784 }
 0x1ce   :  { %746 = vsyncpa [#allocation3], 1 }

</bundles_post_ra>
